<compile_context>
chip_gen: v5e
topology: v5e:2x2
jax: 0.10.0
libtpu: 0.0.40
codegen_flags: <defaults>
</compile_context>

<pallas_src>
import functools

import jax
import jax.numpy as jnp
from jax import lax
from jax.experimental import pallas as pl
from jax.experimental.pallas import tpu as pltpu


def _focal_kernel(x_ref, t_ref, a_ref, out_ref, *, gamma):
    # x_ref: (1, C, tile_s) native dtype, t_ref: (1, 1, tile_s) int32,
    # a_ref: (C, 1) f32 alpha table, out_ref: (1, 1, 1, 128) f32 partial sums.
    x = x_ref[0].astype(jnp.float32)            # (C, tile_s) — math in f32
    t = t_ref[0]                                # (1, tile_s) int32
    a = a_ref[...].astype(jnp.float32)          # (C, 1)
    C, tile_s = x.shape

    # log-softmax over the class (sublane) axis; spatial stays lane-dense.
    m = jnp.max(x, axis=0, keepdims=True)       # (1, tile_s)
    z = x - m
    lse = jnp.log(jnp.sum(jnp.exp(z), axis=0, keepdims=True))   # (1, tile_s)

    # Gather z / alpha at the target class via a one-hot over the class axis.
    # Padded columns carry target == C -> one-hot all-zero -> at == 0 -> loss == 0.
    cls = lax.broadcasted_iota(jnp.int32, (C, tile_s), 0)
    onehot = (cls == t).astype(jnp.float32)                     # (C, tile_s)
    z_t = jnp.sum(z * onehot, axis=0, keepdims=True)            # (1, tile_s)
    at = jnp.sum(a * onehot, axis=0, keepdims=True)             # (1, tile_s)

    logpt = z_t - lse                                           # (1, tile_s)
    la = logpt * at

    if gamma == 0.0:
        # focal term == 1 when gamma == 0 (matches cross-entropy); skip exp/pow.
        loss = -la
    else:
        pt = jnp.exp(logpt)
        base = 1.0 - pt
        if float(gamma).is_integer() and 1.0 <= float(gamma) <= 8.0:
            focal = base
            for _ in range(int(gamma) - 1):
                focal = focal * base            # VPU multiplies, no EUP pow
        else:
            focal = base ** gamma
        loss = -(focal * la)                                    # (1, tile_s)

    # Fold lanes into a single (1, 128) partial with static, lane-aligned slices
    # (pure VPU adds, no cross-lane/XLU reduce, no relayout).
    acc = loss[:, :128]
    for k in range(1, tile_s // 128):
        acc = acc + loss[:, k * 128:(k + 1) * 128]
    out_ref[...] = acc.reshape(1, 1, 1, 128)


def focal_loss(logits, target, *, gamma=0.0, alpha=None, size_average=True,
               tile_s=8192):
    """logits: (N, C) or (N, C, *spatial); target: (N,) or (N, *spatial) int."""
    logits = jnp.asarray(logits)                 # keep native dtype (bf16 stays bf16)
    target = jnp.asarray(target, jnp.int32)

    if logits.ndim > 2:
        N, C = logits.shape[0], logits.shape[1]
        S = 1
        for d in logits.shape[2:]:
            S *= d
        logits3 = logits.reshape(N, C, S)        # free reshape: no NCHW transpose pass
        target2 = target.reshape(N, S)
        B = N
    else:
        # 2-D path: rows are the batch; tiny transpose to put classes on sublanes.
        N, C = logits.shape
        logits3 = jnp.transpose(logits, (1, 0)).reshape(1, C, N)
        target2 = target.reshape(1, N)
        B, S = 1, N

    R = B * S                                    # rows averaged by the reference

    # alpha table gathered by target class.
    if alpha is None:
        alpha_vec = jnp.ones((C,), jnp.float32)
    elif isinstance(alpha, (float, int)):
        # torch builds [alpha, 1-alpha]; for C > 2 extra classes get weight 1.0.
        # TODO(synk): torch would index-error for C > 2 with scalar alpha.
        alpha_vec = jnp.array([float(alpha), 1.0 - float(alpha)], jnp.float32)
        if alpha_vec.shape[0] < C:
            alpha_vec = jnp.concatenate(
                [alpha_vec, jnp.ones((C - alpha_vec.shape[0],), jnp.float32)])
        alpha_vec = alpha_vec[:C]
    else:
        alpha_vec = jnp.asarray(alpha, jnp.float32).reshape(-1)
        if alpha_vec.shape[0] < C:
            alpha_vec = jnp.concatenate(
                [alpha_vec, jnp.ones((C - alpha_vec.shape[0],), jnp.float32)])
        alpha_vec = alpha_vec[:C]
    alpha_col = alpha_vec.reshape(C, 1)

    # Choose a large lane-dense spatial tile, capped so double-buffering stays well
    # inside the default scoped VMEM limit on every generation (incl. v7x 64 MiB).
    itemsize = jnp.dtype(logits3.dtype).itemsize
    budget = 4 * 1024 * 1024                     # bytes per logits buffer
    cap = max(128, (budget // max(1, C * itemsize)) // 128 * 128)
    s_round = ((S + 127) // 128) * 128
    tile = min(max(128, (int(tile_s) // 128) * 128), cap, s_round)
    n_s_tiles = pl.cdiv(S, tile)
    S_pad = n_s_tiles * tile
    if S_pad != S:
        logits3 = jnp.pad(logits3, ((0, 0), (0, 0), (0, S_pad - S)))
        # pad targets with class index C -> padded columns contribute exactly 0 loss
        target2 = jnp.pad(target2, ((0, 0), (0, S_pad - S)), constant_values=C)
    target3 = target2.reshape(B, 1, S_pad)

    kernel = functools.partial(_focal_kernel, gamma=float(gamma))

    partials = pl.pallas_call(
        kernel,
        out_shape=jax.ShapeDtypeStruct((B, n_s_tiles, 1, 128), jnp.float32),
        grid=(B, n_s_tiles),
        in_specs=[
            pl.BlockSpec((1, C, tile), lambda i, j: (i, 0, j)),
            pl.BlockSpec((1, 1, tile), lambda i, j: (i, 0, j)),
            pl.BlockSpec((C, 1), lambda i, j: (0, 0)),
        ],
        out_specs=pl.BlockSpec((1, 1, 1, 128), lambda i, j: (i, j, 0, 0)),
        compiler_params=pltpu.CompilerParams(
            dimension_semantics=("parallel", "parallel")),
    )(logits3, target3, alpha_col)

    total = jnp.sum(partials)                    # tree reduction in the wrapper
    if size_average:
        return total / jnp.float32(R)
    return total


if __name__ == "__main__":
    key = jax.random.PRNGKey(0)
    k1, k2 = jax.random.split(key)

    # small NCHW-style logits + integer targets, consistent with the module
    N, C, H, W = 2, 4, 16, 16
    x = jax.random.normal(k1, (N, C, H, W), dtype=jnp.float32)
    t = jax.random.randint(k2, (N, H, W), 0, C, dtype=jnp.int32)

    # pure-JAX reference pieces
    logits2d = jnp.transpose(x.reshape(N, C, -1), (0, 2, 1)).reshape(-1, C)
    tgt = t.reshape(-1)
    logp = jax.nn.log_softmax(logits2d, axis=-1)
    logpt = jnp.take_along_axis(logp, tgt[:, None], axis=1)[:, 0]
    pt = jnp.exp(logpt)

    # 1) gamma=2, list alpha (the recommended focal setting)
    loss = focal_loss(x, t, gamma=2.0, alpha=[0.25, 0.25, 0.25, 0.25],
                      size_average=True)
    jax.block_until_ready(loss)
    at = jnp.array([0.25, 0.25, 0.25, 0.25], jnp.float32)[tgt]
    ref = jnp.mean(-1.0 * (1.0 - pt) ** 2.0 * (logpt * at))
    assert jnp.allclose(loss, ref, rtol=1e-5, atol=1e-6), (loss, ref)

    # 2) gamma=0, no alpha -> plain cross-entropy mean
    loss0 = focal_loss(x, t, gamma=0.0, alpha=None, size_average=True)
    jax.block_until_ready(loss0)
    ref0 = jnp.mean(-logpt)
    assert jnp.allclose(loss0, ref0, rtol=1e-5, atol=1e-6), (loss0, ref0)

    # 3) 2-D (N, C) input path
    x2 = jax.random.normal(k1, (8, C), dtype=jnp.float32)
    t2 = jax.random.randint(k2, (8,), 0, C, dtype=jnp.int32)
    loss2 = focal_loss(x2, t2, gamma=2.0, alpha=[0.25, 0.25, 0.25, 0.25])
    jax.block_until_ready(loss2)
    logp2 = jax.nn.log_softmax(x2, axis=-1)
    lp2 = jnp.take_along_axis(logp2, t2[:, None], axis=1)[:, 0]
    pt2 = jnp.exp(lp2)
    at2 = jnp.array([0.25, 0.25, 0.25, 0.25], jnp.float32)[t2]
    ref2 = jnp.mean(-1.0 * (1.0 - pt2) ** 2.0 * (lp2 * at2))
    assert jnp.allclose(loss2, ref2, rtol=1e-5, atol=1e-6), (loss2, ref2)

    print("KERNEL_OK")
</pallas_src>

<mosaic_0001>
module attributes {stable_mosaic.version = 11 : i64} {
  func.func @_focal_kernel(%arg0: i32, %arg1: i32, %arg2: memref<1x4x256xf32, #tpu.memory_space<vmem>>, %arg3: memref<1x1x256xi32, #tpu.memory_space<vmem>>, %arg4: memref<4x1xf32, #tpu.memory_space<vmem>>, %arg5: memref<1x1x1x128xf32, #tpu.memory_space<vmem>>) attributes {dimension_semantics = [#tpu.dimension_semantics<parallel>, #tpu.dimension_semantics<parallel>], iteration_bounds = array<i64: 2, 1>, scalar_prefetch = 0 : i64, scratch_operands = 0 : i64, tpu.core_type = #tpu.core_type<tc>, window_params = [{transform_indices = @transform_0, window_bounds = array<i64: 1, 4, 256>}, {transform_indices = @transform_1, window_bounds = array<i64: 1, 1, 256>}, {pipeline_mode = #tpu.pipeline_mode<synchronous>, transform_indices = @transform_2, window_bounds = array<i64: 4, 1>}, {transform_indices = @transform_3, window_bounds = array<i64: 1, 1, 1, 128>}]} {
    %c0 = arith.constant 0 : index
    %c0_0 = arith.constant 0 : index
    %c0_1 = arith.constant 0 : index
    %0 = vector.load %arg2[%c0, %c0_0, %c0_1] : memref<1x4x256xf32, #tpu.memory_space<vmem>>, vector<1x4x256xf32>
    %1 = vector.shape_cast %0 : vector<1x4x256xf32> to vector<4x256xf32>
    %c0_2 = arith.constant 0 : index
    %c0_3 = arith.constant 0 : index
    %c0_4 = arith.constant 0 : index
    %2 = vector.load %arg3[%c0_2, %c0_3, %c0_4] : memref<1x1x256xi32, #tpu.memory_space<vmem>>, vector<1x1x256xi32>
    %3 = vector.shape_cast %2 : vector<1x1x256xi32> to vector<1x256xi32>
    %c0_5 = arith.constant 0 : index
    %c0_6 = arith.constant 0 : index
    %4 = vector.load %arg4[%c0_5, %c0_6] : memref<4x1xf32, #tpu.memory_space<vmem>>, vector<4x1xf32>
    %cst = arith.constant dense<0xFF800000> : vector<256xf32>
    %5 = vector.multi_reduction <maximumf>, %1, %cst [0] : vector<4x256xf32> to vector<256xf32>
    %6 = vector.shape_cast %5 : vector<256xf32> to vector<1x256xf32>
    %7 = vector.broadcast %6 : vector<1x256xf32> to vector<4x256xf32>
    %8 = arith.subf %1, %7 : vector<4x256xf32>
    %9 = math.exp %8 : vector<4x256xf32>
    %cst_7 = arith.constant dense<0.000000e+00> : vector<256xf32>
    %10 = vector.multi_reduction <add>, %9, %cst_7 [0] : vector<4x256xf32> to vector<256xf32>
    %11 = vector.shape_cast %10 : vector<256xf32> to vector<1x256xf32>
    %12 = math.log %11 : vector<1x256xf32>
    %13 = tpu.iota {dimensions = array<i32: 0>} : vector<4x256xi32>
    %14 = vector.broadcast %3 : vector<1x256xi32> to vector<4x256xi32>
    %15 = arith.cmpi eq, %13, %14 : vector<4x256xi32>
    %16 = arith.extui %15 : vector<4x256xi1> to vector<4x256xi32>
    %17 = arith.sitofp %16 : vector<4x256xi32> to vector<4x256xf32>
    %18 = arith.mulf %8, %17 : vector<4x256xf32>
    %cst_8 = arith.constant dense<0.000000e+00> : vector<256xf32>
    %19 = vector.multi_reduction <add>, %18, %cst_8 [0] : vector<4x256xf32> to vector<256xf32>
    %20 = vector.shape_cast %19 : vector<256xf32> to vector<1x256xf32>
    %21 = vector.broadcast %4 : vector<4x1xf32> to vector<4x256xf32>
    %22 = arith.mulf %21, %17 : vector<4x256xf32>
    %cst_9 = arith.constant dense<0.000000e+00> : vector<256xf32>
    %23 = vector.multi_reduction <add>, %22, %cst_9 [0] : vector<4x256xf32> to vector<256xf32>
    %24 = vector.shape_cast %23 : vector<256xf32> to vector<1x256xf32>
    %25 = arith.subf %20, %12 : vector<1x256xf32>
    %26 = arith.mulf %25, %24 : vector<1x256xf32>
    %27 = math.exp %25 : vector<1x256xf32>
    %cst_10 = arith.constant 1.000000e+00 : f32
    %28 = vector.broadcast %cst_10 : f32 to vector<1x256xf32>
    %29 = arith.subf %28, %27 : vector<1x256xf32>
    %30 = arith.mulf %29, %29 : vector<1x256xf32>
    %31 = arith.mulf %30, %26 : vector<1x256xf32>
    %cst_11 = arith.constant 0.000000e+00 : f32
    %32 = vector.broadcast %cst_11 : f32 to vector<1x256xf32>
    %33 = arith.subf %32, %31 : vector<1x256xf32>
    %34 = vector.extract_strided_slice %33 {offsets = [0, 0], sizes = [1, 128], strides = [1, 1]} : vector<1x256xf32> to vector<1x128xf32>
    %35 = vector.extract_strided_slice %33 {offsets = [0, 128], sizes = [1, 128], strides = [1, 1]} : vector<1x256xf32> to vector<1x128xf32>
    %36 = arith.addf %34, %35 : vector<1x128xf32>
    %37 = vector.shape_cast %36 : vector<1x128xf32> to vector<1x1x1x128xf32>
    %c0_12 = arith.constant 0 : index
    %c0_13 = arith.constant 0 : index
    %c0_14 = arith.constant 0 : index
    %c0_15 = arith.constant 0 : index
    %38 = vector.load %arg5[%c0_12, %c0_13, %c0_14, %c0_15] : memref<1x1x1x128xf32, #tpu.memory_space<vmem>>, vector<1x1x1x128xf32>
    tpu.vector_store %arg5[%c0_12, %c0_13, %c0_14, %c0_15], %37 {strides = array<i32>} : memref<1x1x1x128xf32, #tpu.memory_space<vmem>>, vector<1x1x1x128xf32>,
    return
  }
  func.func @transform_0(%arg0: i32, %arg1: i32) -> (i32, i32, i32) {
    %c0_i32 = arith.constant 0 : i32
    %c0_i32_0 = arith.constant 0 : i32
    return %arg0, %c0_i32, %arg1 : i32, i32, i32
  }
  func.func @transform_1(%arg0: i32, %arg1: i32) -> (i32, i32, i32) {
    %c0_i32 = arith.constant 0 : i32
    %c0_i32_0 = arith.constant 0 : i32
    return %arg0, %c0_i32, %arg1 : i32, i32, i32
  }
  func.func @transform_2(%arg0: i32, %arg1: i32) -> (i32, i32) {
    %c0_i32 = arith.constant 0 : i32
    %c0_i32_0 = arith.constant 0 : i32
    %c0_i32_1 = arith.constant 0 : i32
    return %c0_i32, %c0_i32_0 : i32, i32
  }
  func.func @transform_3(%arg0: i32, %arg1: i32) -> (i32, i32, i32, i32) {
    %c0_i32 = arith.constant 0 : i32
    %c0_i32_0 = arith.constant 0 : i32
    %c0_i32_1 = arith.constant 0 : i32
    return %arg0, %arg1, %c0_i32, %c0_i32_0 : i32, i32, i32, i32
  }
}

</mosaic_0001>

<bundles_post_ra>
// kernel: tpu_custom_call.1
= control target key start
LH: loop header
LB: loop body
LE: loop exit
PB: predicated region body
PF: predicated region fallthrough
CT: control target
= control target key end

     0   :  { %8 = vsyncpa [#allocation3], 0  ;;  %s843_s0 = inlined_call_operand.hbm [shape: f32[2,4,256], index: 0, kind: input, shape index: {}]   ;;  %s844_s1 = inlined_call_operand.vmem [shape: s32[2,1,256], index: 1, kind: input, shape index: {}]   ;;  %s845_s2 = inlined_call_operand.vmem [shape: f32[4,1], index: 2, kind: input, shape index: {}]   ;;  %s846_s3 = inlined_call_operand.hbm [shape: f32[2,1,1,128], index: 3, kind: output, shape index: {}]  }
   0x1   :  { %10 = vsyncpa [#allocation3 + $0x1], 0 }
   0x2   :  { %11 = vsyncpa [#allocation4], 0 }
   0x3   :  { %13 = vsyncpa [#allocation4 + $0x1], 0  ;;  %s704_s12 = smov 0   ;;  %s706_s13 = smov 0  }
   0x4   :  { %s708_s14 = smov 0   ;;  %s710_s15 = smov 0  }
   0x5   :  { %s712_s16 = smov 0   ;;  %s714_s17 = smov 0  }
   0x6 LB: > { %s478_s18 = sadd.s32 4294967295, %s680_s17   ;;  %s479_s19 = sadd.s32 4294967294, %s680_s17   ;;  %s680_s17 = sphi %s714_s17, %s19_s17   ;;  %s676_s16 = sphi %s712_s16, %s855_s16   ;;  %s672_s15 = sphi %s710_s15, %s854_s15   ;;  %s668_s14 = sphi %s708_s14, %s853_s14   ;;  %s664_s13 = sphi %s706_s13, %s852_s13   ;;  %s660_s12 = sphi %s704_s12, %s851_s12  }
   0x7   : > { %s31_s20 = sadd.s32 1, %s676_s16  ;;  %s40_s21 = sadd.s32 1, %s668_s14 }
   0x8   : > { %p33_p0 = scmp.ge.s32.totalorder %s31_s20, 2  ;;  %p47_p1 = scmp.ne.s32.totalorder %s668_s14, %s664_s13 }
   0x9   : > { %p48_p2 = scmp.eq.s32.totalorder %s680_s17, 0  ;;  %p53_p3 = scmp.ne.s32.totalorder %s664_s13, %s660_s12 }
   0xa   : > { %s857_s20 = smov (%p33_p0, %s31_s20), 0  ;;  %p54_p5 = scmp.eq.s32.totalorder %s478_s18, 0 }
   0xb   : > { %p745_p4 = por %p48_p2, %p47_p1  ;;  %s35_s23 = ssub.s32 %s676_s16, %s857_s20 }
   0xc   : > { %p128_p6 = scmp.eq.s32.totalorder %s478_s18, 1  ;;  %p38_p7 = scmp.eq.s32.totalorder %s35_s23, 0 }
   0xd   : > { %p751_p8 = por %p54_p5, %p53_p3  ;;  %p134_p10 = scmp.eq.s32.totalorder %s479_s19, 1 }
   0xe   : > { %p755_p9 = por %p128_p6, %p47_p1  ;;  %p481_p12 = scmp.ge.s32.totalorder %s680_s17, 2 }
   0xf   : > { %s760_s26 = scalar_select %p38_p7, %s668_s14, %s40_s21  }
  0x10   : > { %p762_p11 = por %p134_p10, %p53_p3  ;;  %p505_p13 = scmp.lt.s32.totalorder %s680_s17, 2 }
  0x11   : > { %s157_s28 = sand.u32 1, %s668_s14   ;;  %s492_s30 = sshll.u32 %s676_s16, 3 }
  0x12   : > { %s482_s29 = sshll.u32 %s157_s28, 3  ;;  %s168_s6 = scalar_lea.hbm %s843_s0, %s492_s30 }
  0x13   : > { %s161_s7 = scalar_lea.vmem [#allocation2], %s482_s29  ;;  %s170_s9 = sshll.u32 %s168_s6, 4  ;;  %s171_s9 = int_to_ptr.hbm [resolvable:$true] %s170_s9 }
  0x14   : > { %s172_s8 = sshll.u32 %s161_s7, 4  ;;  %p498_p0 = pnand %p505_p13, %p745_p4  ;;  %s173_s8 = int_to_ptr.vmem [resolvable:$true] %s172_s8 }
  0x15   : > { %p485_p1 = scmp.ge.s32.totalorder %s680_s17, 1  ;;  %p189_p2 = scmp.lt.s32.totalorder %s680_s17, 3 }
  0x16   : > { %s158_s10 = scalar_lea.sflag [#allocation3], %s157_s28 }
  0x17   : > { %500 = dma.hbm_to_vmem [thread:$0]  (!%p498_p0), %s171_s9, 128, %s173_s8, %s158_s10  }
  0x18   : > { %p190_p3 = pnand %p485_p1, %p189_p2 }
  0x19   : > { %s778_s11 = sand.u32 (!%p190_p3), 1, %s664_s13  }
  0x1a   : > { %193 = sbr.rel (%p190_p3) target bundleno = 175 (0xaf), region = 32  ;;  %s486_s18 = sshll.u32 (!%p190_p3), %s778_s11, 3 }
  0x1b   : > { %s196_s19 = scalar_lea.sflag (!%p190_p3), [#allocation3], %s778_s11  ;;  %s199_s21 = scalar_lea.vmem (!%p190_p3), [#allocation2], %s486_s18 }
  0x1f   : > { %651 = dma.done.wait (%p751_p8), %s196_s19, 128  }
  0x20   : > { %653 = vsyncadd (%p751_p8), %s196_s19, 4294967168  ;;  %v682_v0 = vmov 0   ;;  %v242_v1 = vld [vmem:[%s845_s2] sm:$0xf]  ;;  %v240_v2 = vld [vmem:[%s199_s21] sm:$0xff]  ;;  %vm249_vm0 = vcmask 1043456   ;;  %v296_v23 = vlaneseq  ;;  %s381_s7 = scalar_lea.hbm %s846_s3, %s672_s15 }
  0x21   : > { %557 = vset.pattern.permute.xlu0 %v682_v0  ;;  %244 = vst [vmem:[#allocation1] ss:$2 sm:$0xff] %v240_v2  ;;  %p232_p4 = scmp.lt.s32.totalorder %s672_s15, 1  ;;  %v683_v29 = vmov 0.0   ;;  %s229_s8 = scalar_lea.vmem [#allocation5], %s778_s11 }
  0x22   : > { %334 = vperm.xlu0 %557, %v242_v1   ;;  %v297_v24 = vshrl.u32 %v296_v23, 7  ;;  %s383_s9 = sshll.u32 %s229_s8, 4  ;;  %s385_s10 = sshll.u32 %s381_s7, 4  ;;  %s384_s9 = int_to_ptr.vmem [resolvable:$true] %s383_s9  ;;  %s386_s10 = int_to_ptr.hbm [resolvable:$true] %s385_s10 }
  0x23   : > { %s233_s24 = scalar_select %p232_p4, %s672_s15, 1 }
  0x24   : > { %s372_s18 = scalar_lea.sflag [#allocation4], %s778_s11  ;;  %s612_s19 = sshra.s32 %s386_s10, 4  ;;  %s613_s19 = int_to_ptr.hbm [resolvable:$true] %s612_s19 }
  0x25   : > { %s487_s28 = sshll.u32 %s233_s24, 1  ;;  %s614_s21 = scalar_lea.hbm %s613_s19, 1 }
  0x26   : > { %s238_s4 = scalar_lea.vmem %s844_s1, %s487_s28  ;;  %p615_p5 = scmp.ne.s32.totalorder %s613_s19, %s614_s21 }
  0x27   : > { %v241_v26 = vld [vmem:[%s238_s4] sm:$0x3]  ;;  %s618_s23 = scalar_lea.hbm %s846_s3, 2  ;;  %p619_p8 = scmp.lt.s32.totalorder %s613_s19, %s846_s3 }
  0x28   : > { %v246_v3 = vld.sshfl [vmem:[#allocation1 + $0x8] sm:$0xff pattern:$0x75316420]  ;;  %v245_v5 = vld.sshfl [vmem:[#allocation1] sm:$0xff pattern:$0x75316420]  ;;  %p616_p6 = pnand %p615_p5, %p755_p9  ;;  %p620_p10 = scmp.lt.s32.totalorder %s618_s23, %s614_s21 }
  0x29   : > { %v257_v4 = vsel %vm249_vm0, %v246_v3, -inf  ;;  %v250_v7 = vsel %vm249_vm0, %v245_v5, -inf  ;;  %v299_v27 = vperm.slane %v241_v26, 1  ;;  %v298_v28 = vperm.slane %v241_v26, 0 }
  0x2a   : > { %v258_v6 = vrot.slane %v257_v4, 4  ;;  %v251_v8 = vrot.slane %v250_v7, 4  ;;  %p617_p7 = pneg %p616_p6  ;;  %p621_p13 = por %p620_p10, %p619_p8 }
  0x2b   : > { %vm301_vm1 = vcmp.eq.s32.totalorder %v297_v24, %v299_v27  ;;  %vm300_vm2 = vcmp.eq.s32.totalorder %v297_v24, %v298_v28 }
  0x2c   : > { %v259_v9 = vmax.f32 %v257_v4, %v258_v6  ;;  %v252_v10 = vmax.f32 %v250_v7, %v251_v8  ;;  %v489_v30 = vsel %vm301_vm1, 1.0, %v683_v29  ;;  %v488_v32 = vsel %vm300_vm2, 1.0, %v683_v29  ;;  %p622_p0 = pnand %p621_p13, %p617_p7 }
  0x2d   : > { %v308_v31 = vrot.slane %v489_v30, 4 }
  0x2e   : > { %v260_v11 = vrot.slane %v259_v9, 2  ;;  %v253_v12 = vrot.slane %v252_v10, 2 }
  0x2f   : > { %v309_v33 = vsel %vm249_vm0, %v488_v32, %v308_v31 }
  0x30   : > { %v261_v13 = vmax.f32 %v259_v9, %v260_v11  ;;  %v254_v14 = vmax.f32 %v252_v10, %v253_v12 }
  0x32   : > { %v262_v15 = vrot.slane %v261_v13, 1  ;;  %v255_v16 = vrot.slane %v254_v14, 1 }
  0x34   : > { %v263_v17 = vmax.f32 %v261_v13, %v262_v15  ;;  %v256_v18 = vmax.f32 %v254_v14, %v255_v16 }
  0x36   : > { %v266_v19 = vrot.slane %v263_v17, 4 }
  0x38   : > { %v267_v20 = vsel %vm249_vm0, %v256_v18, %v266_v19 }
  0x39   : > { %v269_v21 = vsub.f32 %v240_v2, %v267_v20 }
  0x3b   : > { %v270_v22 = vmul.f32 1.442695, %v269_v21  ;;  %v311_v36 = vmul.f32 %v309_v33, %v269_v21 }
  0x3d   : > { %558 = vpow2.f32 %v270_v22 }
  0x43   : > { %v559_v25 = vpop.eup %558 }
  0x44   : > { %273 = vst [vmem:[#allocation1] ss:$2 sm:$0xff] %v559_v25 }
  0x4b   : > { %v274_v34 = vld.sshfl [vmem:[#allocation1] sm:$0xff pattern:$0x75316420]  ;;  %v275_v35 = vld.sshfl [vmem:[#allocation1 + $0x8] sm:$0xff pattern:$0x75316420] }
  0x4c   : > { %313 = vst [vmem:[#allocation1] ss:$2 sm:$0xff] %v311_v36  ;;  %v278_v37 = vsel %vm249_vm0, %v274_v34, 0.0  ;;  %v285_v38 = vsel %vm249_vm0, %v275_v35, 0.0 }
  0x4d   : > { %v279_v39 = vrot.slane %v278_v37, 4  ;;  %v286_v40 = vrot.slane %v285_v38, 4 }
  0x4f   : > { %v280_v41 = vadd.f32 %v279_v39, %v278_v37  ;;  %v287_v42 = vadd.f32 %v286_v40, %v285_v38 }
  0x51   : > { %v281_v44 = vrot.slane %v280_v41, 2  ;;  %v288_v46 = vrot.slane %v287_v42, 2 }
  0x53   : > { %v314_v43 = vld.sshfl [vmem:[#allocation1] sm:$0xff pattern:$0x75316420]  ;;  %v315_v45 = vld.sshfl [vmem:[#allocation1 + $0x8] sm:$0xff pattern:$0x75316420]  ;;  %v282_v49 = vadd.f32 %v281_v44, %v280_v41  ;;  %v289_v50 = vadd.f32 %v288_v46, %v287_v42 }
  0x54   : > { %v318_v47 = vsel %vm249_vm0, %v314_v43, 0.0  ;;  %v325_v48 = vsel %vm249_vm0, %v315_v45, 0.0 }
  0x55   : > { %v319_v51 = vrot.slane %v318_v47, 4  ;;  %v326_v52 = vrot.slane %v325_v48, 4  ;;  %v283_v53 = vrot.slane %v282_v49, 1  ;;  %v290_v54 = vrot.slane %v289_v50, 1 }
  0x57   : > { %v320_v55 = vadd.f32 %v319_v51, %v318_v47  ;;  %v327_v56 = vadd.f32 %v326_v52, %v325_v48  ;;  %v284_v57 = vadd.f32 %v283_v53, %v282_v49  ;;  %v291_v58 = vadd.f32 %v290_v54, %v289_v50 }
  0x59   : > { %v321_v59 = vrot.slane %v320_v55, 2  ;;  %v328_v60 = vrot.slane %v327_v56, 2  ;;  %560 = vlog2.f32 %v284_v57 }
  0x5a   : > { %562 = vlog2.f32 %v291_v58 }
  0x5b   : > { %v322_v61 = vadd.f32 %v321_v59, %v320_v55  ;;  %v329_v62 = vadd.f32 %v328_v60, %v327_v56 }
  0x5d   : > { %v323_v63 = vrot.slane %v322_v61, 1  ;;  %v330_v1 = vrot.slane %v329_v62, 1 }
  0x5f   : > { %v561_v0 = vpop.eup %560  ;;  %v324_v4 = vadd.f32 %v323_v63, %v322_v61  ;;  %v331_v6 = vadd.f32 %v330_v1, %v329_v62 }
  0x60   : > { %v563_v2 = vpop.eup %562  ;;  %v293_v3 = vmul.f32 0.6931472, %v561_v0 }
  0x61   : > { %v295_v5 = vmul.f32 0.6931472, %v563_v2 }
  0x62   : > { %v353_v7 = vsub.f32 %v324_v4, %v293_v3 }
  0x63   : > { %v354_v8 = vsub.f32 %v331_v6, %v295_v5 }
  0x64   : > { %v357_v9 = vmul.f32 1.442695, %v353_v7 }
  0x65   : > { %v359_v10 = vmul.f32 1.442695, %v354_v8 }
  0x66   : > { %564 = vpow2.f32 %v357_v9 }
  0x67   : > { %566 = vpow2.f32 %v359_v10 }
  0x6c   : > { %v565_v18 = vpop.eup %564 }
  0x6d   : > { %v567_v21 = vpop.eup %566  ;;  %v361_v26 = vsub.f32 1.0, %v565_v18 }
  0x6e   : > { %v362_v27 = vsub.f32 1.0, %v567_v21 }
  0x70   : > { %v364_v33 = vmul.f32 %v362_v27, %v362_v27 }
  0x94   : > { %v335_v11 = vpop.permute.xlu0 %334 }
  0x95   : > { %v337_v12 = vmul.f32 %v488_v32, %v335_v11  ;;  %v338_v13 = vmul.f32 %v489_v30, %v335_v11  ;;  %v363_v32 = vmul.f32 %v361_v26, %v361_v26 }
  0x97   : > { %v339_v14 = vsel %vm249_vm0, %v337_v12, 0.0  ;;  %v346_v15 = vsel %vm249_vm0, %v338_v13, 0.0 }
  0x98   : > { %v340_v16 = vrot.slane %v339_v14, 4  ;;  %v347_v17 = vrot.slane %v346_v15, 4 }
  0x9a   : > { %v341_v19 = vadd.f32 %v340_v16, %v339_v14  ;;  %v348_v20 = vadd.f32 %v347_v17, %v346_v15 }
  0x9c   : > { %v342_v22 = vrot.slane %v341_v19, 2  ;;  %v349_v23 = vrot.slane %v348_v20, 2 }
  0x9e   : > { %v343_v24 = vadd.f32 %v342_v22, %v341_v19  ;;  %v350_v25 = vadd.f32 %v349_v23, %v348_v20 }
  0xa0   : > { %v344_v28 = vrot.slane %v343_v24, 1  ;;  %v351_v29 = vrot.slane %v350_v25, 1 }
  0xa2   : > { %v345_v30 = vadd.f32 %v344_v28, %v343_v24  ;;  %v352_v31 = vadd.f32 %v351_v29, %v350_v25 }
  0xa4   : > { %v355_v34 = vmul.f32 %v353_v7, %v345_v30  ;;  %v356_v35 = vmul.f32 %v354_v8, %v352_v31 }
  0xa6   : > { %v365_v36 = vmul.f32 %v363_v32, %v355_v34  ;;  %v366_v37 = vmul.f32 %v364_v33, %v356_v35 }
  0xa8   : > { %v367_v38 = vsub.f32 0.0, %v365_v36  ;;  %v368_v39 = vsub.f32 0.0, %v366_v37 }
  0xaa   : > { %v369_v40 = vadd.f32 %v368_v39, %v367_v38 }
  0xac   : > { %370 = vst [vmem:[%s229_s8] sm:$0x1] %v369_v40 }
  0xad   : > { %625 = shalt.err (!%p622_p0)
}
  0xae   : > { %495 = dma.vmem_to_hbm [thread:$0]  (%p755_p9), %s384_s9, 16, %s386_s10, %s372_s18  }
  0xaf PF: > { %s397_s11 = sand.u32 1, %s660_s12   ;;  %p502_p1 = pnand %p481_p12, %p762_p11 }
  0xb0   : > { %s398_s29 = scalar_lea.sflag [#allocation4], %s397_s11 }
  0xb1   : > { %p503_p2 = pneg %p502_p1 }
  0xb3   : > { %655 = dma.done.wait (%p503_p2), %s398_s29, 16  }
  0xb4   : > { %657 = vsyncadd (%p503_p2), %s398_s29, 4294967280  ;;  %s19_s17 = sadd.s32 1, %s680_s17   ;;  %s851_s12 = smov %s664_s13 }
  0xb5   : > { %p16_p3 = scmp.ge.s32.totalorder %s19_s17, 4   ;;  %s852_s13 = smov %s668_s14 }
  0xb6   : > { %s853_s14 = smov %s760_s26  ;;  %s854_s15 = smov %s676_s16 }
  0xb7   : > { %s855_s16 = smov %s857_s20  ;;  %18 = sbr.rel (!%p16_p3) target bundleno = 6 (0x6), region = 80 }
  0xbc   :  { %403 = vsyncpa [#allocation3], 1 }
  0xbd   :  { %405 = vsyncpa [#allocation3 + $0x1], 1 }
  0xbe   :  { %406 = vsyncpa [#allocation4], 1 }
  0xbf   :  { %408 = vsyncpa [#allocation4 + $0x1], 1 }

</bundles_post_ra>
